<compile_context>
chip_gen: v6e
topology: v6e:2x2x1
jax: 0.10.0
libtpu: 0.0.40
codegen_flags: <defaults>
</compile_context>

<pallas_src>
import functools

import jax
import jax.numpy as jnp
from jax.experimental import pallas as pl
from jax.experimental.pallas import tpu as pltpu


def _ppm_kernel(xk_ref, xq_ref, t_ref, o_ref, *, gamma, slab_dtype):
    """One (batch, query-tile, key-tile) grid step.

    xk_ref: (1, TK, C)  normalized keys, pixel-major  -> MXU-native (M, K) lhs
    xq_ref: (1, C, TQ)  normalized queries, chan-major -> MXU-native (K, N) rhs
    t_ref : (1, C, TK)  transform_net output for this key tile (lhs of out dot)
    o_ref : (1, C, TQ)  output columns; resident across the key axis (accumulator)
    """
    k = pl.program_id(2)

    @pl.when(k == 0)
    def _():
        o_ref[...] = jnp.zeros_like(o_ref)

    # sim[kk, q] = <x_n[:, key kk], x_n[:, query q]> : (TK, C) @ (C, TQ).
    # Both operands already in MXU-native layout -> no in-kernel transpose.
    sim = jnp.dot(xk_ref[0], xq_ref[0], preferred_element_type=jnp.float32)

    # pow(gamma) as unrolled VPU multiplies in the slab dtype (bf16 on the fast
    # path halves slab VMEM and ld/st pressure).  The module applies ReLU AFTER
    # the power, so for even gamma the slab is already >= 0 and ReLU is dropped;
    # odd gamma still needs it.
    s = sim.astype(slab_dtype)
    p = s
    for _ in range(gamma - 1):
        p = p * s
    if gamma % 2 == 1:
        p = jnp.maximum(p, 0.0).astype(slab_dtype)

    # out[:, q_tile] += t[:, k_tile] @ sim[k_tile, q_tile]   (f32 accumulation)
    o_ref[0] = o_ref[0] + jnp.dot(t_ref[0], p, preferred_element_type=jnp.float32)


def _pick_tile(hw, max_tile):
    """Pad HW to a 128 multiple and pick the largest 128-multiple tile that
    divides the padded extent (128 always does)."""
    hw_p = ((hw + 127) // 128) * 128
    for t in (512, 256, 128):
        if t <= max_tile and hw_p % t == 0:
            return t, hw_p
    return 128, hw_p


def ppm_forward(x_nchw, conv_w, conv_b, *, gamma=2, mxu_dtype=jnp.bfloat16,
                max_tile=512):
    """PPM forward (num_layers=1 transform_net, positive integer gamma).

    x_nchw: (B, C, H, W); conv_w: (C, C) (out_ch, in_ch); conv_b: (C,).
    mxu_dtype=float32 gives the semantics-faithful validation path.
    """
    if not isinstance(gamma, int) or gamma < 1:
        raise ValueError("gamma must be a positive Python int, got %r" % (gamma,))

    b, c, h, w = x_nchw.shape
    hw = h * w
    tile, hw_p = _pick_tile(hw, max_tile)
    n_q = hw_p // tile
    n_k = hw_p // tile

    # ---- Hoisted, query-tile-invariant work (plain XLA, once per call) ------
    x_flat = x_nchw.reshape(b, c, hw).astype(jnp.float32)
    if hw_p != hw:
        # Zero-padded pixels: zero norm -> zero x_n column -> zero similarity,
        # so they contribute nothing to real outputs; padded *query* columns
        # are sliced off after the kernel.
        x_flat = jnp.pad(x_flat, ((0, 0), (0, 0), (0, hw_p - hw)))

    # F.normalize(x, dim=1): x / max(||x||_2, 1e-12) per pixel.
    norm = jnp.sqrt(jnp.sum(x_flat * x_flat, axis=1, keepdims=True))
    x_n = x_flat / jnp.maximum(norm, 1e-12)                       # (B, C, HWp)
    # transform_net: 1x1 conv == per-pixel linear, t = W @ x + b.
    t = (jnp.einsum("oc,bci->boi", conv_w.astype(jnp.float32), x_flat)
         + conv_b.astype(jnp.float32)[None, :, None])             # (B, C, HWp)

    # MXU feeds: already cast to the matmul dtype and in MXU-native layouts.
    xq_n = x_n.astype(mxu_dtype)                                  # (B, C, HWp)
    xk_nt = jnp.transpose(x_n, (0, 2, 1)).astype(mxu_dtype)       # (B, HWp, C)
    t_feed = t.astype(mxu_dtype)                                  # (B, C, HWp)

    in_bytes = jnp.dtype(mxu_dtype).itemsize

    # VMEM budget derived from the actual blocks (double-buffered inputs +
    # resident f32 output block + sim slab copies), with margin; capped at the
    # smallest physical VMEM (v7x, 64 MiB).
    est = (2 * tile * c * in_bytes          # xk_nt tile
           + 2 * c * tile * in_bytes        # xq_n tile
           + 2 * c * tile * in_bytes        # t tile
           + 2 * c * tile * 4               # f32 output block
           + tile * tile * (4 + 2 * in_bytes))  # sim f32 + powered slab copies
    vmem_limit = int(min(max(4 * est, 8 << 20), 64 << 20))

    # Advisory cost for the XLA scheduler.
    flops = b * n_q * n_k * (4 * c * tile * tile + (gamma - 1) * tile * tile)
    bytes_accessed = (b * n_q * hw_p * c * in_bytes    # key tiles (re-read per query tile)
                      + b * hw_p * c * in_bytes        # query tiles (once per batch)
                      + b * n_q * hw_p * c * in_bytes  # t tiles
                      + b * c * hw_p * 4)              # output write-back
    cost = pl.CostEstimate(flops=flops, transcendentals=0,
                           bytes_accessed=bytes_accessed)

    kernel = functools.partial(_ppm_kernel, gamma=gamma, slab_dtype=mxu_dtype)

    out_cm = pl.pallas_call(
        kernel,
        out_shape=jax.ShapeDtypeStruct((b, c, hw_p), jnp.float32),
        grid_spec=pltpu.PrefetchScalarGridSpec(
            num_scalar_prefetch=0,
            grid=(b, n_q, n_k),
            in_specs=[
                # Normalized keys, pixel-major: new tile every key step.
                pl.BlockSpec((1, tile, c), lambda i, j, k: (i, k, 0)),
                # Normalized queries, channel-major: invariant over k, so the
                # tile is fetched once per (batch, query tile).
                pl.BlockSpec((1, c, tile), lambda i, j, k: (i, 0, j)),
                # transform_net output columns for the current key tile.
                pl.BlockSpec((1, c, tile), lambda i, j, k: (i, 0, k)),
            ],
            # Output block invariant over k -> stays resident in VMEM and acts
            # as the f32 accumulator; lane-dense (last dim = 128 multiple).
            out_specs=pl.BlockSpec((1, c, tile), lambda i, j, k: (i, 0, j)),
        ),
        compiler_params=pltpu.CompilerParams(
            # batch and query-tile steps are independent (megacore-shardable);
            # the key axis carries the accumulation -> arbitrary, and last.
            dimension_semantics=("parallel", "parallel", "arbitrary"),
            vmem_limit_bytes=vmem_limit,
        ),
        cost_estimate=cost,
    )(xk_nt, xq_n, t_feed)

    return out_cm[:, :, :hw].reshape(b, c, h, w)


def ppm_reference(x_nchw, conv_w, conv_b, *, gamma=2):
    """Pure-JAX reference mirroring the PyTorch module (pow, then ReLU)."""
    b, c, h, w = x_nchw.shape
    x_flat = x_nchw.reshape(b, c, h * w)
    norm = jnp.sqrt(jnp.sum(x_flat * x_flat, axis=1, keepdims=True))
    x_norm = x_flat / jnp.maximum(norm, 1e-12)
    sim = jnp.einsum("bci,bcj->bij", x_norm, x_norm) ** gamma
    sim = jnp.maximum(sim, 0.0)
    t = jnp.einsum("oc,bci->boi", conv_w, x_flat) + conv_b[None, :, None]
    out = jnp.einsum("bci,bij->bcj", t, sim)
    return out.reshape(b, c, h, w)


if __name__ == "__main__":
    B, C, H, W = 2, 4, 16, 16

    key = jax.random.PRNGKey(0)
    kx, kw, kb = jax.random.split(key, 3)

    x = jax.random.normal(kx, (B, C, H, W), dtype=jnp.float32)
    # Deterministic synthetic 1x1-conv parameters (Conv2d(chan, chan, 1)).
    conv_w = jax.random.normal(kw, (C, C), dtype=jnp.float32) * 0.1
    conv_b = jax.random.normal(kb, (C,), dtype=jnp.float32) * 0.1

    ref = jax.block_until_ready(ppm_reference(x, conv_w, conv_b, gamma=2))

    # 1) f32 MXU path, single-tile grid: semantics-faithful, tight tolerance.
    out_f32 = jax.block_until_ready(
        ppm_forward(x, conv_w, conv_b, gamma=2, mxu_dtype=jnp.float32))
    assert out_f32.shape == (B, C, H, W)
    assert jnp.allclose(out_f32, ref, atol=5e-3, rtol=5e-3), "f32 kernel mismatch"

    # 2) f32 path with forced 128-wide tiles: exercises key-axis accumulation.
    out_tiled = jax.block_until_ready(
        ppm_forward(x, conv_w, conv_b, gamma=2, mxu_dtype=jnp.float32, max_tile=128))
    assert jnp.allclose(out_tiled, ref, atol=5e-3, rtol=5e-3), "multi-tile mismatch"

    # 3) Ragged spatial size (150 pixels -> padded to 256) + odd gamma (ReLU path).
    x_r = jax.random.normal(kx, (B, C, 10, 15), dtype=jnp.float32)
    ref_r = jax.block_until_ready(ppm_reference(x_r, conv_w, conv_b, gamma=3))
    out_r = jax.block_until_ready(
        ppm_forward(x_r, conv_w, conv_b, gamma=3, mxu_dtype=jnp.float32))
    assert out_r.shape == x_r.shape
    assert jnp.allclose(out_r, ref_r, atol=5e-3, rtol=5e-3), "padded/odd-gamma mismatch"

    # 4) Default bf16 fast path (operands + slab quantized -> loose tolerance).
    out_bf16 = jax.block_until_ready(ppm_forward(x, conv_w, conv_b, gamma=2))
    assert out_bf16.shape == (B, C, H, W)
    assert jnp.allclose(out_bf16, ref, atol=1e-1, rtol=1e-1), "bf16 kernel mismatch"

    print("KERNEL_OK")
</pallas_src>

<mosaic_0001>
module attributes {stable_mosaic.version = 11 : i64} {
  func.func @_ppm_kernel(%arg0: i32, %arg1: i32, %arg2: i32, %arg3: memref<1x256x4xf32, #tpu.memory_space<vmem>>, %arg4: memref<1x4x256xf32, #tpu.memory_space<vmem>>, %arg5: memref<1x4x256xf32, #tpu.memory_space<vmem>>, %arg6: memref<1x4x256xf32, #tpu.memory_space<vmem>>) attributes {dimension_semantics = [#tpu.dimension_semantics<parallel>, #tpu.dimension_semantics<parallel>, #tpu.dimension_semantics<arbitrary>], iteration_bounds = array<i64: 2, 1, 1>, scalar_prefetch = 0 : i64, scratch_operands = 0 : i64, tpu.core_type = #tpu.core_type<tc>, window_params = [{transform_indices = @transform_0, window_bounds = array<i64: 1, 256, 4>}, {transform_indices = @transform_1, window_bounds = array<i64: 1, 4, 256>}, {transform_indices = @transform_2, window_bounds = array<i64: 1, 4, 256>}, {transform_indices = @transform_3, window_bounds = array<i64: 1, 4, 256>}]} {
    %c0_i32 = arith.constant 0 : i32
    %0 = arith.cmpi eq, %arg2, %c0_i32 : i32
    %1 = arith.extui %0 : i1 to i32
    %c0_i32_0 = arith.constant 0 : i32
    %2 = arith.cmpi ne, %1, %c0_i32_0 : i32
    scf.if %2 {
      %cst_16 = arith.constant 0.000000e+00 : f32
      %18 = vector.broadcast %cst_16 : f32 to vector<1x4x256xf32>
      %c0_17 = arith.constant 0 : index
      %c0_18 = arith.constant 0 : index
      %c0_19 = arith.constant 0 : index
      %19 = vector.load %arg6[%c0_17, %c0_18, %c0_19] : memref<1x4x256xf32, #tpu.memory_space<vmem>>, vector<1x4x256xf32>
      tpu.vector_store %arg6[%c0_17, %c0_18, %c0_19], %18 {strides = array<i32>} : memref<1x4x256xf32, #tpu.memory_space<vmem>>, vector<1x4x256xf32>,
    } else {
    }
    %c0 = arith.constant 0 : index
    %c0_1 = arith.constant 0 : index
    %c0_2 = arith.constant 0 : index
    %3 = vector.load %arg3[%c0, %c0_1, %c0_2] : memref<1x256x4xf32, #tpu.memory_space<vmem>>, vector<1x256x4xf32>
    %4 = vector.shape_cast %3 : vector<1x256x4xf32> to vector<256x4xf32>
    %c0_3 = arith.constant 0 : index
    %c0_4 = arith.constant 0 : index
    %c0_5 = arith.constant 0 : index
    %5 = vector.load %arg4[%c0_3, %c0_4, %c0_5] : memref<1x4x256xf32, #tpu.memory_space<vmem>>, vector<1x4x256xf32>
    %6 = vector.shape_cast %5 : vector<1x4x256xf32> to vector<4x256xf32>
    %cst = arith.constant dense<0.000000e+00> : vector<256x256xf32>
    %7 = tpu.matmul %4, %6, %cst {dimension_numbers = #tpu.dot_dimension_numbers<[1], [0], [0], [1], [0, 0, 1, 1], [], []>} : vector<256x4xf32>, vector<4x256xf32>, vector<256x256xf32> -> vector<256x256xf32>
    %8 = arith.mulf %7, %7 : vector<256x256xf32>
    %c0_6 = arith.constant 0 : index
    %c0_7 = arith.constant 0 : index
    %c0_8 = arith.constant 0 : index
    %9 = vector.load %arg6[%c0_6, %c0_7, %c0_8] : memref<1x4x256xf32, #tpu.memory_space<vmem>>, vector<1x4x256xf32>
    %10 = vector.shape_cast %9 : vector<1x4x256xf32> to vector<4x256xf32>
    %c0_9 = arith.constant 0 : index
    %c0_10 = arith.constant 0 : index
    %c0_11 = arith.constant 0 : index
    %11 = vector.load %arg5[%c0_9, %c0_10, %c0_11] : memref<1x4x256xf32, #tpu.memory_space<vmem>>, vector<1x4x256xf32>
    %12 = vector.shape_cast %11 : vector<1x4x256xf32> to vector<4x256xf32>
    %cst_12 = arith.constant dense<0.000000e+00> : vector<4x256xf32>
    %13 = tpu.matmul %12, %8, %cst_12 {dimension_numbers = #tpu.dot_dimension_numbers<[1], [0], [0], [1], [0, 0, 1, 1], [], []>} : vector<4x256xf32>, vector<256x256xf32>, vector<4x256xf32> -> vector<4x256xf32>
    %14 = arith.addf %10, %13 : vector<4x256xf32>
    %c0_13 = arith.constant 0 : index
    %c0_14 = arith.constant 0 : index
    %c0_15 = arith.constant 0 : index
    %15 = vector.load %arg6[%c0_13, %c0_14, %c0_15] : memref<1x4x256xf32, #tpu.memory_space<vmem>>, vector<1x4x256xf32>
    %16 = vector.shape_cast %15 : vector<1x4x256xf32> to vector<4x256xf32>
    %17 = vector.shape_cast %14 : vector<4x256xf32> to vector<1x4x256xf32>
    tpu.vector_store %arg6[%c0_13, %c0_14, %c0_15], %17 {strides = array<i32>} : memref<1x4x256xf32, #tpu.memory_space<vmem>>, vector<1x4x256xf32>,
    return
  }
  func.func @transform_0(%arg0: i32, %arg1: i32, %arg2: i32) -> (i32, i32, i32) {
    %c0_i32 = arith.constant 0 : i32
    %c0_i32_0 = arith.constant 0 : i32
    return %arg0, %arg2, %c0_i32 : i32, i32, i32
  }
  func.func @transform_1(%arg0: i32, %arg1: i32, %arg2: i32) -> (i32, i32, i32) {
    %c0_i32 = arith.constant 0 : i32
    %c0_i32_0 = arith.constant 0 : i32
    return %arg0, %c0_i32, %arg1 : i32, i32, i32
  }
  func.func @transform_2(%arg0: i32, %arg1: i32, %arg2: i32) -> (i32, i32, i32) {
    %c0_i32 = arith.constant 0 : i32
    %c0_i32_0 = arith.constant 0 : i32
    return %arg0, %c0_i32, %arg2 : i32, i32, i32
  }
  func.func @transform_3(%arg0: i32, %arg1: i32, %arg2: i32) -> (i32, i32, i32) {
    %c0_i32 = arith.constant 0 : i32
    %c0_i32_0 = arith.constant 0 : i32
    return %arg0, %c0_i32, %arg1 : i32, i32, i32
  }
}

</mosaic_0001>

<bundles_post_ra>
// kernel: tpu_custom_call.1
= control target key start
LH: loop header
LB: loop body
LE: loop exit
PB: predicated region body
PF: predicated region fallthrough
CT: control target
= control target key end

     0   :  { %8 = vsyncpa [#allocation3], 0  ;;  %s1497_s0 = inlined_call_operand.vmem [shape: f32[2,256,4], index: 0, kind: input, shape index: {}]   ;;  %s1498_s1 = inlined_call_operand.vmem [shape: f32[2,4,256], index: 1, kind: input, shape index: {}]   ;;  %s1499_s2 = inlined_call_operand.vmem [shape: f32[2,4,256], index: 2, kind: input, shape index: {}]   ;;  %s1500_s3 = inlined_call_operand.hbm [shape: f32[2,4,256], index: 3, kind: output, shape index: {}]  }
   0x1   :  { %10 = vsyncpa [#allocation3 + $0x1], 0  ;;  %s1169_s12 = smov 0   ;;  %s1171_s13 = smov 0  }
   0x2   :  { %s1173_s14 = smov 0   ;;  %s1175_s15 = smov 0  }
   0x3   :  { %s1177_s16 = smov 0   ;;  %s1179_s17 = smov 0  }
   0x4 LB: > { %s956_s18 = sadd.s32 4294967295, %s1145_s17   ;;  %s957_s19 = sadd.s32 4294967294, %s1145_s17   ;;  %s1145_s17 = sphi %s1179_s17, %s16_s17   ;;  %s1141_s16 = sphi %s1177_s16, %s1507_s16   ;;  %s1137_s15 = sphi %s1175_s15, %s1506_s15   ;;  %s1133_s14 = sphi %s1173_s14, %s1505_s14   ;;  %s1129_s13 = sphi %s1171_s13, %s1504_s13   ;;  %s1125_s12 = sphi %s1169_s12, %s1503_s12  }
   0x5   : > { %s35_s20 = sadd.s32 1, %s1141_s16  ;;  %s128_s21 = sadd.s32 1, %s1133_s14 }
   0x6   : > { %p37_p0 = scmp.ge.s32.totalorder %s35_s20, 2  ;;  %p138_p1 = scmp.ne.s32.totalorder %s1133_s14, %s1129_s13 }
   0x7   : > { %p139_p2 = scmp.eq.s32.totalorder %s956_s18, 1  ;;  %p144_p3 = scmp.ne.s32.totalorder %s1129_s13, %s1125_s12 }
   0x8   : > { %s1509_s20 = smov (%p37_p0, %s35_s20), 0  ;;  %p145_p5 = scmp.eq.s32.totalorder %s957_s19, 1 }
   0x9   : > { %p1209_p4 = por %p139_p2, %p138_p1  ;;  %s123_s23 = ssub.s32 %s1141_s16, %s1509_s20 }
   0xa   : > { %p960_p6 = scmp.ge.s32.totalorder %s1145_s17, 1  ;;  %p126_p7 = scmp.eq.s32.totalorder %s123_s23, 0 }
   0xb   : > { %p1216_p8 = por %p145_p5, %p144_p3  ;;  %p202_p9 = scmp.lt.s32.totalorder %s1145_s17, 3 }
   0xc   : > { %s1222_s25 = scalar_select %p126_p7, %s1133_s14, %s128_s21  }
   0xd   : > { %p203_p10 = pnand %p960_p6, %p202_p9 }
   0xe   : > { %p249_p11 = scmp.lt.s32.totalorder (!%p203_p10), %s1137_s15, 1  ;;  %s245_s11 = sand.u32 (!%p203_p10), 1, %s1129_s13  }
   0xf   : > { %206 = sbr.rel (%p203_p10) target bundleno = 592 (0x250), region = 32  ;;  %s961_s18 = sshll.u32 (!%p203_p10), %s245_s11, 3 }
  0x10   : > { %s1010_s19 = sshll.u32 (!%p203_p10), %s1137_s15, 7  ;;  %s247_s21 = scalar_lea.vmem (!%p203_p10), [#allocation2], %s961_s18 }
  0x11   : > { %s841_s23 = sshll.u32 (!%p203_p10), %s247_s21, 4  ;;  %s825_s29 = scalar_lea.sflag (!%p203_p10), [#allocation3], %s245_s11  ;;  %s842_s23 = int_to_ptr.vmem [resolvable:$true] %s841_s23 }
  0x12   : > { %s1069_s30 = scalar_lea.vmem (!%p203_p10), %s842_s23, 128 }
  0x13   : > { %p1070_p12 = scmp.ne.s32.totalorder (!%p203_p10), %s842_s23, %s1069_s30 }
  0x14   : > { %v1147_v0 = vmov 0.0   ;;  %s1227_s26 = scalar_select %p249_p11, %s1137_s15, 1  ;;  %vm416_vm0 = vcmask 1043456   ;;  %vm319_vm1 = vcmask 31744  }
  0x15   : > { %485 = vmatprep.mubr.f32.mxu0 %v1147_v0  ;;  %p1071_p13 = pnand %p1070_p12, %p1209_p4 }
  0x16   : > { %s1007_s27 = sshll.u32 %s1227_s26, 8  ;;  %s1008_s28 = sshll.u32 %s1227_s26, 3 }
  0x17   : > { %s1234_s4 = scalar_lea.vmem %s1497_s0, %s1007_s27  ;;  %s266_s7 = scalar_lea.vmem %s1498_s1, %s1008_s28 }
  0x18   : > { %v316_v1 = vld [vmem:[%s266_s7] sm:$0xff]  ;;  %v285_v4 = vld [vmem:[%s1234_s4 + $0x8] sm:$0xff]  ;;  %v286_v5 = vld [vmem:[%s1234_s4 + $0x10] sm:$0xff]  ;;  %s276_s10 = scalar_lea.vmem %s1499_s2, %s1008_s28  ;;  %s839_s28 = scalar_lea.hbm %s1500_s3, %s1010_s19 }
  0x19   : > { %v318_v2 = vcombine.high %v316_v1, %v316_v1  ;;  %v284_v3 = vld [vmem:[%s1234_s4] sm:$0xff]  ;;  %v287_v6 = vld [vmem:[%s1234_s4 + $0x18] sm:$0xff]  ;;  %v289_v8 = vld [vmem:[%s1234_s4 + $0x28] sm:$0xff]  ;;  %p1072_p0 = pneg %p1071_p13 }
  0x1a   : > { %v288_v7 = vld [vmem:[%s1234_s4 + $0x20] sm:$0xff]  ;;  %v290_v9 = vld [vmem:[%s1234_s4 + $0x30] sm:$0xff]  ;;  %v291_v10 = vld [vmem:[%s1234_s4 + $0x38] sm:$0xff] }
  0x1b   : > { %968 = vmatprep.subr.msk.mxu0 %vm416_vm0, %v318_v2  ;;  %v292_v11 = vld [vmem:[%s1234_s4 + $0x40] sm:$0xff]  ;;  %v293_v12 = vld [vmem:[%s1234_s4 + $0x48] sm:$0xff]  ;;  %v294_v13 = vld [vmem:[%s1234_s4 + $0x50] sm:$0xff] }
  0x1c   : > { %969 = vmatpush1.msk.msra.mxu0 %vm416_vm0, %v316_v1  ;;  %v295_v14 = vld [vmem:[%s1234_s4 + $0x58] sm:$0xff]  ;;  %v296_v15 = vld [vmem:[%s1234_s4 + $0x60] sm:$0xff]  ;;  %v297_v16 = vld [vmem:[%s1234_s4 + $0x68] sm:$0xff] }
  0x1d   : > { %970 = vmatmul.mubr.msk.f32.vlgmr.msra.gmra.mxu0 %vm319_vm1, %v284_v3  ;;  %v298_v17 = vld [vmem:[%s1234_s4 + $0x70] sm:$0xff]  ;;  %v299_v18 = vld [vmem:[%s1234_s4 + $0x78] sm:$0xff]  ;;  %v300_v19 = vld [vmem:[%s1234_s4 + $0x80] sm:$0xff] }
  0x1e   : > { %491 = vmatprep.mubr.f32.mxu0 %v1147_v0  ;;  %v301_v20 = vld [vmem:[%s1234_s4 + $0x88] sm:$0xff]  ;;  %v302_v21 = vld [vmem:[%s1234_s4 + $0x90] sm:$0xff]  ;;  %v303_v22 = vld [vmem:[%s1234_s4 + $0x98] sm:$0xff] }
  0x1f   : > { %v304_v23 = vld [vmem:[%s1234_s4 + $0xa0] sm:$0xff]  ;;  %v305_v24 = vld [vmem:[%s1234_s4 + $0xa8] sm:$0xff]  ;;  %v306_v25 = vld [vmem:[%s1234_s4 + $0xb0] sm:$0xff] }
  0x20   : > { %v307_v26 = vld [vmem:[%s1234_s4 + $0xb8] sm:$0xff]  ;;  %v308_v27 = vld [vmem:[%s1234_s4 + $0xc0] sm:$0xff]  ;;  %v309_v28 = vld [vmem:[%s1234_s4 + $0xc8] sm:$0xff] }
  0x21   : > { %971 = vmatmul.mubr.msk.f32.gmra.mxu0 %vm319_vm1, %v285_v4  ;;  %v310_v29 = vld [vmem:[%s1234_s4 + $0xd0] sm:$0xff]  ;;  %v311_v30 = vld [vmem:[%s1234_s4 + $0xd8] sm:$0xff]  ;;  %v312_v31 = vld [vmem:[%s1234_s4 + $0xe0] sm:$0xff] }
  0x22   : > { %497 = vmatprep.mubr.f32.mxu0 %v1147_v0  ;;  %v313_v32 = vld [vmem:[%s1234_s4 + $0xe8] sm:$0xff]  ;;  %v314_v33 = vld [vmem:[%s1234_s4 + $0xf0] sm:$0xff]  ;;  %v315_v34 = vld [vmem:[%s1234_s4 + $0xf8] sm:$0xff]  ;;  %s1148_s4 = smov [#allocation2]  }
  0x23   : > { %v1369_v50 = vld [vmem:[%s276_s10] sm:$0xff]  ;;  %s1073_s5 = sshll.u32 %s1148_s4, 4  ;;  %s1074_s5 = int_to_ptr.vmem [resolvable:$false] %s1073_s5 }
  0x24   : > { %v745_v52 = vcombine.high %v1369_v50, %v1369_v50  ;;  %s1075_s6 = scalar_lea.vmem %s1074_s5, 256  ;;  %p1076_p1 = scmp.lt.s32.totalorder %s842_s23, %s1074_s5 }
  0x25   : > { %972 = vmatmul.mubr.msk.f32.gmra.mxu0 %vm319_vm1, %v286_v5  ;;  %p1077_p2 = scmp.lt.s32.totalorder %s1075_s6, %s1069_s30 }
  0x26   : > { %503 = vmatprep.mubr.f32.mxu0 %v1147_v0  ;;  %811 = vmatprep.mubr.f32.mxu1 %v745_v52 }
  0x27   : > { %p1078_p3 = por %p1077_p2, %p1076_p1 }
  0x29   : > { %973 = vmatmul.mubr.msk.f32.gmra.mxu0 %vm319_vm1, %v287_v6  ;;  %p1079_p5 = pnand %p1078_p3, %p1072_p0 }
  0x2a   : > { %509 = vmatprep.mubr.f32.mxu0 %v1147_v0 }
  0x2d   : > { %974 = vmatmul.mubr.msk.f32.gmra.mxu0 %vm319_vm1, %v288_v7 }
  0x2e   : > { %515 = vmatprep.mubr.f32.mxu0 %v1147_v0 }
  0x31   : > { %975 = vmatmul.mubr.msk.f32.gmra.mxu0 %vm319_vm1, %v289_v8 }
  0x32   : > { %521 = vmatprep.mubr.f32.mxu0 %v1147_v0 }
  0x35   : > { %976 = vmatmul.mubr.msk.f32.gmra.mxu0 %vm319_vm1, %v290_v9 }
  0x36   : > { %527 = vmatprep.mubr.f32.mxu0 %v1147_v0 }
  0x39   : > { %977 = vmatmul.mubr.msk.f32.gmra.mxu0 %vm319_vm1, %v291_v10 }
  0x3a   : > { %533 = vmatprep.mubr.f32.mxu0 %v1147_v0 }
  0x3d   : > { %978 = vmatmul.mubr.msk.f32.gmra.mxu0 %vm319_vm1, %v292_v11 }
  0x3e   : > { %539 = vmatprep.mubr.f32.mxu0 %v1147_v0 }
  0x41   : > { %979 = vmatmul.mubr.msk.f32.gmra.mxu0 %vm319_vm1, %v293_v12 }
  0x42   : > { %545 = vmatprep.mubr.f32.mxu0 %v1147_v0 }
  0x45   : > { %980 = vmatmul.mubr.msk.f32.gmra.mxu0 %vm319_vm1, %v294_v13 }
  0x46   : > { %551 = vmatprep.mubr.f32.mxu0 %v1147_v0 }
  0x49   : > { %981 = vmatmul.mubr.msk.f32.gmra.mxu0 %vm319_vm1, %v295_v14 }
  0x4a   : > { %557 = vmatprep.mubr.f32.mxu0 %v1147_v0 }
  0x4d   : > { %982 = vmatmul.mubr.msk.f32.gmra.mxu0 %vm319_vm1, %v296_v15 }
  0x4e   : > { %563 = vmatprep.mubr.f32.mxu0 %v1147_v0 }
  0x51   : > { %983 = vmatmul.mubr.msk.f32.gmra.mxu0 %vm319_vm1, %v297_v16 }
  0x52   : > { %569 = vmatprep.mubr.f32.mxu0 %v1147_v0 }
  0x55   : > { %984 = vmatmul.mubr.msk.f32.gmra.mxu0 %vm319_vm1, %v298_v17 }
  0x56   : > { %575 = vmatprep.mubr.f32.mxu0 %v1147_v0 }
  0x59   : > { %985 = vmatmul.mubr.msk.f32.gmra.mxu0 %vm319_vm1, %v299_v18 }
  0x5a   : > { %581 = vmatprep.mubr.f32.mxu0 %v1147_v0 }
  0x5d   : > { %986 = vmatmul.mubr.msk.f32.gmra.mxu0 %vm319_vm1, %v300_v19 }
  0x5e   : > { %587 = vmatprep.mubr.f32.mxu0 %v1147_v0 }
  0x61   : > { %987 = vmatmul.mubr.msk.f32.gmra.mxu0 %vm319_vm1, %v301_v20 }
  0x62   : > { %593 = vmatprep.mubr.f32.mxu0 %v1147_v0 }
  0x65   : > { %988 = vmatmul.mubr.msk.f32.gmra.mxu0 %vm319_vm1, %v302_v21 }
  0x66   : > { %599 = vmatprep.mubr.f32.mxu0 %v1147_v0 }
  0x69   : > { %989 = vmatmul.mubr.msk.f32.gmra.mxu0 %vm319_vm1, %v303_v22 }
  0x6a   : > { %605 = vmatprep.mubr.f32.mxu0 %v1147_v0 }
  0x6d   : > { %990 = vmatmul.mubr.msk.f32.gmra.mxu0 %vm319_vm1, %v304_v23 }
  0x6e   : > { %611 = vmatprep.mubr.f32.mxu0 %v1147_v0 }
  0x71   : > { %991 = vmatmul.mubr.msk.f32.gmra.mxu0 %vm319_vm1, %v305_v24 }
  0x72   : > { %617 = vmatprep.mubr.f32.mxu0 %v1147_v0 }
  0x75   : > { %992 = vmatmul.mubr.msk.f32.gmra.mxu0 %vm319_vm1, %v306_v25 }
  0x76   : > { %623 = vmatprep.mubr.f32.mxu0 %v1147_v0 }
  0x79   : > { %993 = vmatmul.mubr.msk.f32.gmra.mxu0 %vm319_vm1, %v307_v26 }
  0x7a   : > { %629 = vmatprep.mubr.f32.mxu0 %v1147_v0 }
  0x7d   : > { %994 = vmatmul.mubr.msk.f32.gmra.mxu0 %vm319_vm1, %v308_v27 }
  0x7e   : > { %635 = vmatprep.mubr.f32.mxu0 %v1147_v0 }
  0x81   : > { %995 = vmatmul.mubr.msk.f32.gmra.mxu0 %vm319_vm1, %v309_v28 }
  0x82   : > { %641 = vmatprep.mubr.f32.mxu0 %v1147_v0 }
  0x85   : > { %996 = vmatmul.mubr.msk.f32.gmra.mxu0 %vm319_vm1, %v310_v29 }
  0x86   : > { %647 = vmatprep.mubr.f32.mxu0 %v1147_v0 }
  0x89   : > { %997 = vmatmul.mubr.msk.f32.gmra.mxu0 %vm319_vm1, %v311_v30 }
  0x8a   : > { %653 = vmatprep.mubr.f32.mxu0 %v1147_v0 }
  0x8d   : > { %998 = vmatmul.mubr.msk.f32.gmra.mxu0 %vm319_vm1, %v312_v31 }
  0x8e   : > { %659 = vmatprep.mubr.f32.mxu0 %v1147_v0 }
  0x91   : > { %999 = vmatmul.mubr.msk.f32.gmra.mxu0 %vm319_vm1, %v313_v32 }
  0x92   : > { %665 = vmatprep.mubr.f32.mxu0 %v1147_v0 }
  0x95   : > { %1000 = vmatmul.mubr.msk.f32.gmra.mxu0 %vm319_vm1, %v314_v33 }
  0x96   : > { %671 = vmatprep.mubr.f32.mxu0 %v1147_v0 }
  0x99   : > { %1001 = vmatmul.mubr.msk.f32.gmra.mxu0 %vm319_vm1, %v315_v34 }
  0xdd   : > { %v1336_v35 = vpop.f32.mrf.mxu0 }
  0xdf   : > { %v1338_v36 = vpop.f32.mrf.mxu0 }
  0xe1   : > { %v1340_v37 = vpop.f32.mrf.mxu0 }
  0xe3   : > { %v1342_v38 = vpop.f32.mrf.mxu0 }
  0xe5   : > { %v1344_v39 = vpop.f32.mrf.mxu0 }
  0xe7   : > { %v1346_v40 = vpop.f32.mrf.mxu0 }
  0xe9   : > { %v1348_v41 = vpop.f32.mrf.mxu0 }
  0xeb   : > { %v1350_v42 = vpop.f32.mrf.mxu0 }
  0xed   : > { %v1352_v43 = vpop.f32.mrf.mxu0 }
  0xef   : > { %v1354_v44 = vpop.f32.mrf.mxu0 }
  0xf1   : > { %v1356_v45 = vpop.f32.mrf.mxu0 }
  0xf3   : > { %v1358_v46 = vpop.f32.mrf.mxu0 }
  0xf4   : > { %v689_v52 = vmul.f32 %v1358_v46, %v1358_v46  ;;  %v685_v46 = vmul.f32 %v1350_v42, %v1350_v42  ;;  %v681_v42 = vmul.f32 %v1342_v38, %v1342_v38 }
  0xf5   : > { %v1360_v47 = vpop.f32.mrf.mxu0 }
  0xf6   : > { %v690_v33 = vmul.f32 %v1360_v47, %v1360_v47  ;;  %v686_v47 = vmul.f32 %v1352_v43, %v1352_v43  ;;  %v682_v43 = vmul.f32 %v1344_v39, %v1344_v39 }
  0xf7   : > { %v1362_v48 = vpop.f32.mrf.mxu0 }
  0xf8   : > { %v691_v32 = vmul.f32 %v1362_v48, %v1362_v48  ;;  %v687_v48 = vmul.f32 %v1354_v44, %v1354_v44  ;;  %v683_v44 = vmul.f32 %v1346_v40, %v1346_v40  ;;  %v678_v40 = vmul.f32 %v1336_v35, %v1336_v35 }
  0xf9   : > { %v529_v49 = vpop.f32.mrf.mxu0 }
  0xfa   : > { %v692_v30 = vmul.f32 %v529_v49, %v529_v49  ;;  %v688_v49 = vmul.f32 %v1356_v45, %v1356_v45  ;;  %v684_v45 = vmul.f32 %v1348_v41, %v1348_v41  ;;  %v680_v41 = vmul.f32 %v1340_v37, %v1340_v37 }
  0xfb   : > { %v531_v51 = vpop.f32.mrf.mxu0 }
  0xfc   : > { %v693_v29 = vmul.f32 %v531_v51, %v531_v51 }
  0xfd   : > { %v535_v53 = vpop.f32.mrf.mxu0 }
  0xfe   : > { %v694_v27 = vmul.f32 %v535_v53, %v535_v53 }
  0xff   : > { %v537_v54 = vpop.f32.mrf.mxu0 }
 0x100   : > { %v695_v26 = vmul.f32 %v537_v54, %v537_v54 }
 0x101   : > { %v541_v55 = vpop.f32.mrf.mxu0 }
 0x102   : > { %v696_v24 = vmul.f32 %v541_v55, %v541_v55 }
 0x103   : > { %v543_v56 = vpop.f32.mrf.mxu0 }
 0x104   : > { %v697_v23 = vmul.f32 %v543_v56, %v543_v56 }
 0x105   : > { %v547_v57 = vpop.f32.mrf.mxu0 }
 0x106   : > { %v698_v21 = vmul.f32 %v547_v57, %v547_v57  ;;  %v679_v57 = vmul.f32 %v1338_v36, %v1338_v36 }
 0x107   : > { %v549_v58 = vpop.f32.mrf.mxu0 }
 0x108   : > { %v699_v20 = vmul.f32 %v549_v58, %v549_v58 }
 0x109   : > { %v553_v59 = vpop.f32.mrf.mxu0 }
 0x10a   : > { %v700_v18 = vmul.f32 %v553_v59, %v553_v59 }
 0x10b   : > { %v555_v60 = vpop.f32.mrf.mxu0 }
 0x10c   : > { %v701_v17 = vmul.f32 %v555_v60, %v555_v60 }
 0x10d   : > { %v559_v61 = vpop.f32.mrf.mxu0 }
 0x10e   : > { %v702_v15 = vmul.f32 %v559_v61, %v559_v61 }
 0x10f   : > { %v561_v62 = vpop.f32.mrf.mxu0 }
 0x110   : > { %v703_v14 = vmul.f32 %v561_v62, %v561_v62 }
 0x111   : > { %v565_v63 = vpop.f32.mrf.mxu0 }
 0x112   : > { %v704_v12 = vmul.f32 %v565_v63, %v565_v63 }
 0x113   : > { %v567_v0 = vpop.f32.mrf.mxu0 }
 0x114   : > { %v705_v11 = vmul.f32 %v567_v0, %v567_v0 }
 0x115   : > { %v571_v1 = vpop.f32.mrf.mxu0 }
 0x116   : > { %v706_v9 = vmul.f32 %v571_v1, %v571_v1 }
 0x117   : > { %v573_v2 = vpop.f32.mrf.mxu0 }
 0x118   : > { %v707_v8 = vmul.f32 %v573_v2, %v573_v2 }
 0x119   : > { %v577_v3 = vpop.f32.mrf.mxu0 }
 0x11a   : > { %v708_v6 = vmul.f32 %v577_v3, %v577_v3 }
 0x11b   : > { %v579_v4 = vpop.f32.mrf.mxu0 }
 0x11c   : > { %v709_v5 = vmul.f32 %v579_v4, %v579_v4 }
 0x11d   : > { %v1373_v7 = vpop.f32.mrf.mxu0 }
 0x11e   : > { %747 = vmatprep.subr.mxu1 %v709_v5 }
 0x11f   : > { %v1375_v10 = vpop.f32.mrf.mxu0  ;;  %748 = vmatpush1.msra.mxu1 %v708_v6 }
 0x120   : > { %749 = vmatprep.subr.mxu1 %v707_v8 }
 0x121   : > { %v1377_v13 = vpop.f32.mrf.mxu0  ;;  %750 = vmatpush1.msra.mxu1 %v706_v9 }
 0x122   : > { %751 = vmatprep.subr.mxu1 %v705_v11 }
 0x123   : > { %v1379_v16 = vpop.f32.mrf.mxu0  ;;  %752 = vmatpush1.msra.mxu1 %v704_v12 }
 0x124   : > { %753 = vmatprep.subr.mxu1 %v703_v14 }
 0x125   : > { %v1381_v19 = vpop.f32.mrf.mxu0  ;;  %754 = vmatpush1.msra.mxu1 %v702_v15 }
 0x126   : > { %755 = vmatprep.subr.mxu1 %v701_v17 }
 0x127   : > { %v1383_v22 = vpop.f32.mrf.mxu0  ;;  %756 = vmatpush1.msra.mxu1 %v700_v18 }
 0x128   : > { %757 = vmatprep.subr.mxu1 %v699_v20 }
 0x129   : > { %v1385_v25 = vpop.f32.mrf.mxu0  ;;  %758 = vmatpush1.msra.mxu1 %v698_v21 }
 0x12a   : > { %759 = vmatprep.subr.mxu1 %v697_v23 }
 0x12b   : > { %v1387_v28 = vpop.f32.mrf.mxu0  ;;  %760 = vmatpush1.msra.mxu1 %v696_v24 }
 0x12c   : > { %761 = vmatprep.subr.mxu1 %v695_v26 }
 0x12d   : > { %v1389_v31 = vpop.f32.mrf.mxu0  ;;  %762 = vmatpush1.msra.mxu1 %v694_v27 }
 0x12e   : > { %763 = vmatprep.subr.mxu1 %v693_v29 }
 0x12f   : > { %v1395_v34 = vpop.f32.mrf.mxu0  ;;  %764 = vmatpush1.msra.mxu1 %v692_v30 }
 0x130   : > { %765 = vmatprep.subr.mxu1 %v691_v32 }
 0x131   : > { %v1401_v51 = vpop.f32.mrf.mxu0  ;;  %766 = vmatpush1.msra.mxu1 %v690_v33 }
 0x132   : > { %767 = vmatprep.subr.mxu1 %v689_v52 }
 0x133   : > { %v1407_v53 = vpop.f32.mrf.mxu0  ;;  %768 = vmatpush1.msra.mxu1 %v688_v49 }
 0x134   : > { %769 = vmatprep.subr.mxu1 %v687_v48  ;;  %v721_v49 = vmul.f32 %v1407_v53, %v1407_v53  ;;  %v720_v48 = vmul.f32 %v1401_v51, %v1401_v51  ;;  %v716_v53 = vmul.f32 %v1385_v25, %v1385_v25  ;;  %v715_v51 = vmul.f32 %v1383_v22, %v1383_v22 }
 0x135   : > { %v1413_v54 = vpop.f32.mrf.mxu0  ;;  %770 = vmatpush1.msra.mxu1 %v686_v47  ;;  %v719_v47 = vmul.f32 %v1395_v34, %v1395_v34  ;;  %v714_v34 = vmul.f32 %v1381_v19, %v1381_v19  ;;  %v711_v25 = vmul.f32 %v1375_v10, %v1375_v10  ;;  %v710_v22 = vmul.f32 %v1373_v7, %v1373_v7 }
 0x136   : > { %771 = vmatprep.subr.mxu1 %v685_v46  ;;  %v722_v52 = vmul.f32 %v1413_v54, %v1413_v54  ;;  %v718_v46 = vmul.f32 %v1389_v31, %v1389_v31  ;;  %v713_v31 = vmul.f32 %v1379_v16, %v1379_v16 }
 0x137   : > { %v1419_v55 = vpop.f32.mrf.mxu0  ;;  %772 = vmatpush1.msra.mxu1 %v684_v45  ;;  %v717_v45 = vmul.f32 %v1387_v28, %v1387_v28  ;;  %v712_v28 = vmul.f32 %v1377_v13, %v1377_v13 }
 0x138   : > { %773 = vmatprep.subr.mxu1 %v683_v44  ;;  %v723_v33 = vmul.f32 %v1419_v55, %v1419_v55 }
 0x139   : > { %v625_v56 = vpop.f32.mrf.mxu0  ;;  %774 = vmatpush1.msra.mxu1 %v682_v43 }
 0x13a   : > { %775 = vmatprep.subr.mxu1 %v681_v42  ;;  %v724_v32 = vmul.f32 %v625_v56, %v625_v56 }
 0x13b   : > { %v627_v39 = vpop.f32.mrf.mxu0  ;;  %776 = vmatpush1.msra.mxu1 %v680_v41 }
 0x13c   : > { %777 = vmatprep.subr.mxu1 %v679_v57  ;;  %v725_v30 = vmul.f32 %v627_v39, %v627_v39 }
 0x13d   : > { %v631_v58 = vpop.f32.mrf.mxu0  ;;  %778 = vmatpush1.msra.mxu1 %v678_v40 }
 0x13e   : > { %v726_v29 = vmul.f32 %v631_v58, %v631_v58 }
 0x13f   : > { %v633_v59 = vpop.f32.mrf.mxu0 }
 0x140   : > { %v727_v27 = vmul.f32 %v633_v59, %v633_v59 }
 0x141   : > { %v637_v38 = vpop.f32.mrf.mxu0 }
 0x142   : > { %v728_v26 = vmul.f32 %v637_v38, %v637_v38 }
 0x143   : > { %v639_v60 = vpop.f32.mrf.mxu0 }
 0x144   : > { %v729_v24 = vmul.f32 %v639_v60, %v639_v60 }
 0x145   : > { %v643_v61 = vpop.f32.mrf.mxu0 }
 0x146   : > { %v730_v23 = vmul.f32 %v643_v61, %v643_v61 }
 0x147   : > { %v645_v62 = vpop.f32.mrf.mxu0 }
 0x148   : > { %v731_v21 = vmul.f32 %v645_v62, %v645_v62 }
 0x149   : > { %v649_v37 = vpop.f32.mrf.mxu0 }
 0x14a   : > { %v732_v20 = vmul.f32 %v649_v37, %v649_v37 }
 0x14b   : > { %v651_v63 = vpop.f32.mrf.mxu0 }
 0x14c   : > { %v733_v18 = vmul.f32 %v651_v63, %v651_v63 }
 0x14d   : > { %v655_v0 = vpop.f32.mrf.mxu0 }
 0x14e   : > { %v734_v17 = vmul.f32 %v655_v0, %v655_v0 }
 0x14f   : > { %v657_v1 = vpop.f32.mrf.mxu0 }
 0x150   : > { %v735_v15 = vmul.f32 %v657_v1, %v657_v1 }
 0x151   : > { %v661_v2 = vpop.f32.mrf.mxu0 }
 0x152   : > { %v736_v14 = vmul.f32 %v661_v2, %v661_v2 }
 0x153   : > { %v663_v36 = vpop.f32.mrf.mxu0 }
 0x154   : > { %v737_v12 = vmul.f32 %v663_v36, %v663_v36 }
 0x155   : > { %v667_v3 = vpop.f32.mrf.mxu0 }
 0x156   : > { %v738_v11 = vmul.f32 %v667_v3, %v667_v3 }
 0x157   : > { %v669_v4 = vpop.f32.mrf.mxu0 }
 0x158   : > { %v739_v9 = vmul.f32 %v669_v4, %v669_v4 }
 0x159   : > { %v673_v5 = vpop.f32.mrf.mxu0 }
 0x15a   : > { %v740_v8 = vmul.f32 %v673_v5, %v673_v5 }
 0x15b   : > { %v675_v35 = vpop.f32.mrf.mxu0 }
 0x15c   : > { %v741_v6 = vmul.f32 %v675_v35, %v675_v35 }
 0x15e   : > { %779 = vmatprep.subr.mxu1 %v741_v6 }
 0x15f   : > { %780 = vmatpush2.msra.mxu1 %v740_v8 }
 0x160   : > { %781 = vmatprep.subr.mxu1 %v739_v9 }
 0x161   : > { %782 = vmatpush2.msra.mxu1 %v738_v11 }
 0x162   : > { %783 = vmatprep.subr.mxu1 %v737_v12 }
 0x163   : > { %784 = vmatpush2.msra.mxu1 %v736_v14 }
 0x164   : > { %785 = vmatprep.subr.mxu1 %v735_v15 }
 0x165   : > { %786 = vmatpush2.msra.mxu1 %v734_v17 }
 0x166   : > { %787 = vmatprep.subr.mxu1 %v733_v18 }
 0x167   : > { %788 = vmatpush2.msra.mxu1 %v732_v20 }
 0x168   : > { %789 = vmatprep.subr.mxu1 %v731_v21 }
 0x169   : > { %790 = vmatpush2.msra.mxu1 %v730_v23 }
 0x16a   : > { %791 = vmatprep.subr.mxu1 %v729_v24 }
 0x16b   : > { %792 = vmatpush2.msra.mxu1 %v728_v26 }
 0x16c   : > { %793 = vmatprep.subr.mxu1 %v727_v27 }
 0x16d   : > { %794 = vmatpush2.msra.mxu1 %v726_v29 }
 0x16e   : > { %795 = vmatprep.subr.mxu1 %v725_v30 }
 0x16f   : > { %796 = vmatpush2.msra.mxu1 %v724_v32 }
 0x170   : > { %797 = vmatprep.subr.mxu1 %v723_v33 }
 0x171   : > { %798 = vmatpush2.msra.mxu1 %v722_v52 }
 0x172   : > { %799 = vmatprep.subr.mxu1 %v721_v49 }
 0x173   : > { %800 = vmatpush2.msra.mxu1 %v720_v48 }
 0x174   : > { %801 = vmatprep.subr.mxu1 %v719_v47 }
 0x175   : > { %802 = vmatpush2.msra.mxu1 %v718_v46 }
 0x176   : > { %803 = vmatprep.subr.mxu1 %v717_v45 }
 0x177   : > { %804 = vmatpush2.msra.mxu1 %v716_v53 }
 0x178   : > { %805 = vmatprep.subr.mxu1 %v715_v51 }
 0x179   : > { %806 = vmatpush2.msra.mxu1 %v714_v34 }
 0x17a   : > { %807 = vmatprep.subr.mxu1 %v713_v31 }
 0x17b   : > { %808 = vmatpush2.msra.mxu1 %v712_v28 }
 0x17c   : > { %809 = vmatprep.subr.mxu1 %v711_v25 }
 0x17d   : > { %810 = vmatpush2.msra.mxu1 %v710_v22 }
 0x17e   : > { %812 = vmatmul.mubr.f32.vlgmr.msra.gmra.mxu1 %v1369_v50 }
 0x23e   : > { %v813_v16 = vpop.f32.mrf.mxu1 }
 0x240   : > { %v815_v19 = vpop.f32.mrf.mxu1 }
 0x241   : > { %v820_v13 = vcombine.low %v813_v16, %v815_v19 }
 0x243   : > { %823 = vst [vmem:[%s247_s21] sm:$0xff] %v820_v13 }
 0x244   : > { %1082 = shalt.err (!%p1079_p5)
}
 0x245   : > { %s1083_s15 = scalar_lea.hbm %s839_s28, 128  ;;  %s1087_s9 = scalar_lea.hbm %s1500_s3, 256 }
 0x246   : > { %p1084_p6 = scmp.ne.s32.totalorder %s839_s28, %s1083_s15  ;;  %p1088_p10 = scmp.lt.s32.totalorder %s839_s28, %s1500_s3 }
 0x247   : > { %p1089_p11 = scmp.lt.s32.totalorder %s1087_s9, %s1083_s15 }
 0x248   : > { %p1085_p7 = pnand %p1084_p6, %p1209_p4 }
 0x249   : > { %p1090_p12 = por %p1089_p11, %p1088_p10 }
 0x24a   : > { %p1086_p9 = pneg %p1085_p7 }
 0x24c   : > { %p1091_p13 = pnand %p1090_p12, %p1086_p9 }
 0x24e   : > { %1094 = shalt.err (!%p1091_p13)
}
 0x24f   : > { %1011 = dma.vmem_to_hbm [thread:$0]  (%p1209_p4), %s842_s23, 128, %s839_s28, %s825_s29  }
 0x250 PF: > { %p1017_p0 = scmp.ge.s32.totalorder %s1145_s17, 2  ;;  %s853_s18 = sand.u32 1, %s1125_s12  }
 0x251   : > { %s854_s19 = scalar_lea.sflag [#allocation3], %s853_s18 }
 0x252   : > { %p1014_p1 = pnand %p1017_p0, %p1216_p8 }
 0x254   : > { %p1015_p2 = pneg %p1014_p1 }
 0x256   : > { %1120 = dma.done.wait (%p1015_p2), %s854_s19, 128  }
 0x257   : > { %1122 = vsyncadd (%p1015_p2), %s854_s19, 4294967168  ;;  %s16_s17 = sadd.s32 1, %s1145_s17   ;;  %s1503_s12 = smov %s1129_s13 }
 0x258   : > { %p13_p3 = scmp.ge.s32.totalorder %s16_s17, 4   ;;  %s1504_s13 = smov %s1133_s14 }
 0x259   : > { %s1505_s14 = smov %s1222_s25  ;;  %s1506_s15 = smov %s1141_s16 }
 0x25a   : > { %s1507_s16 = smov %s1509_s20  ;;  %15 = sbr.rel (!%p13_p3) target bundleno = 4 (0x4), region = 77 }
 0x25f   :  { %859 = vsyncpa [#allocation3], 1 }
 0x260   :  { %861 = vsyncpa [#allocation3 + $0x1], 1 }

</bundles_post_ra>
